<compile_context>
chip_gen: v5e
topology: v5e:2x2
jax: 0.10.0
libtpu: 0.0.40
codegen_flags: <defaults>
</compile_context>

<pallas_src>
import functools

import jax
import jax.numpy as jnp
from jax.experimental import pallas as pl
from jax.experimental.pallas import tpu as pltpu


def _round_up(x, m):
    return -(-x // m) * m


def _ploss_kernel(bias_ref, s_t_ref, ind_ref, f_ref, y_ref, mask_ref,
                  pmargin_ref, loss_ref, m_sc, z_sc, num_sc,
                  *, num_ns_tiles, apply_bias):
    k = pl.program_id(1)

    f = f_ref[...].astype(jnp.float32)                       # (TB, Lp)
    # potential tile: (TB, NS_TILE) = f @ S^T  (S^T pre-transposed in wrapper)
    pot = jnp.dot(f, s_t_ref[...], preferred_element_type=jnp.float32)
    if apply_bias:
        pot = pot + bias_ref[...]                            # -1e30 on pad states

    def _finalize(num, z):
        y = y_ref[...].astype(jnp.float32)
        msk = mask_ref[...].astype(jnp.float32)
        # pMargin = num / z: approx reciprocal + one Newton step (~f32 exact).
        inv_z = pl.reciprocal(z, approx=True)
        inv_z = inv_z * (2.0 - z * inv_z)
        p = jnp.clip(num * inv_z, 0.0, 1.0)
        pmargin_ref[...] = p.astype(pmargin_ref.dtype)
        # BCE(reduction='none') with torch's log clamp at -100, in log space.
        log_z = jnp.log(z)
        log_p = jnp.maximum(jnp.log(num) - log_z, -100.0)
        log_1mp = jnp.maximum(jnp.log(jnp.maximum(z - num, 0.0)) - log_z, -100.0)
        bce = -(y * log_p + (1.0 - y) * log_1mp)
        # Per-tile partial, kept per-label so the store is lane-dense.
        partial = jnp.sum(bce * msk, axis=0, keepdims=True)  # (1, Lp)
        loss_ref[...] = partial[None]                        # (1, 1, Lp)

    if num_ns_tiles == 1:
        # Single-pass path (resident S^T tile covers all states).
        m = jnp.max(pot, axis=-1, keepdims=True)
        j = jnp.exp(pot - m)
        z = jnp.sum(j, axis=-1, keepdims=True)
        num = jnp.dot(j, ind_ref[...], preferred_element_type=jnp.float32)
        _finalize(num, z)
    else:
        # Flash-style online accumulation over NS tiles.
        @pl.when(k == 0)
        def _():
            m_sc[...] = jnp.full(m_sc.shape, -1e30, jnp.float32)
            z_sc[...] = jnp.zeros(z_sc.shape, jnp.float32)
            num_sc[...] = jnp.zeros(num_sc.shape, jnp.float32)

        m_prev = m_sc[...]
        m_new = jnp.maximum(m_prev, jnp.max(pot, axis=-1, keepdims=True))
        alpha = jnp.exp(m_prev - m_new)
        j = jnp.exp(pot - m_new)
        z_sc[...] = alpha * z_sc[...] + jnp.sum(j, axis=-1, keepdims=True)
        num_sc[...] = alpha * num_sc[...] + jnp.dot(
            j, ind_ref[...], preferred_element_type=jnp.float32)
        m_sc[...] = m_new

        @pl.when(k == num_ns_tiles - 1)
        def _():
            _finalize(num_sc[...], z_sc[...])


def ploss_forward(f, legal_state, y, mask, *, ns_tile=None):
    """Returns (loss_scalar, pMargin) matching pLoss.forward(auto_mode=False)."""
    B, L = f.shape
    NS = legal_state.shape[0]
    assert legal_state.shape == (NS, L)

    # Per-generation VMEM budget: 85% of physical (headroom on v7x's 64 MiB,
    # full use of the 128 MiB parts on v5e/v6e).
    try:
        vmem_cap = int(pltpu.get_tpu_info().vmem_capacity_bytes)
        if vmem_cap < (32 << 20):
            vmem_cap = 64 << 20
    except Exception:
        vmem_cap = 64 << 20
    vmem_budget = int(vmem_cap * 0.85)

    L_pad = _round_up(L, 128)

    # Lane-dense NS tiling: single tile while resident S^T / indicator stay
    # under ~25% of the budget, otherwise a flash-style NS grid axis.
    if ns_tile is None:
        ns_full = _round_up(NS, 128)
        per_ns_col = 2 * 2 * L_pad * 4             # s_t + ind, double-buffered f32
        max_ns = max(128, (vmem_budget // 4) // per_ns_col // 128 * 128)
        NS_TILE = min(ns_full, max_ns)
    else:
        NS_TILE = _round_up(ns_tile, 128)
    NS_pad = _round_up(NS, NS_TILE)
    num_ns_tiles = NS_pad // NS_TILE

    # Batch tile derived from what fits VMEM (double-buffered streamed tiles,
    # scratch accumulators, live f32 temporaries), balanced across tiles.
    SUB = 32
    f_size = jnp.dtype(f.dtype).itemsize
    per_row = (2 * f_size + 2 * 2 + 2 * 2 + 2 * 4) * L_pad   # f, y, mask, pMargin
    per_row += 4 * L_pad + 8                                  # num/m/z scratch
    per_row += 6 * 4 * L_pad + 4 * 4 * NS_TILE                # live temporaries
    fixed = 2 * 2 * NS_TILE * L_pad * 4                       # s_t + ind buffers
    fixed += 2 * NS_TILE * 4 + 4 * L_pad * 4 + (4 << 20)      # bias, loss, headroom
    tb_budget = max(SUB, max(0, vmem_budget - fixed) // per_row // SUB * SUB)

    b_ceil = _round_up(B, SUB)
    if b_ceil <= tb_budget:
        TB = b_ceil
    else:
        n_tiles = -(-B // tb_budget)
        TB = _round_up(-(-B // n_tiles), SUB)
    num_b_tiles = -(-B // TB)
    B_pad = num_b_tiles * TB

    def pad2(x, r, c):
        return jnp.pad(x, ((0, r - x.shape[0]), (0, c - x.shape[1])))

    # Operands prepared ONCE in the wrapper (no in-kernel transpose/indicator).
    S_pad = pad2(legal_state.astype(jnp.float32), NS_pad, L_pad)
    s_t = jnp.transpose(S_pad)                               # (L_pad, NS_pad)
    ind = (S_pad > 0).astype(jnp.float32)                    # (NS_pad, L_pad)
    apply_bias = NS_pad != NS
    state_id = jnp.arange(NS_pad, dtype=jnp.int32)[None, :]
    bias = jnp.where(state_id < NS, 0.0, -1e30).astype(jnp.float32)  # (1, NS_pad)

    # Streamed operands: f keeps the caller dtype; y/mask downcast to bf16
    # (exact for {0,1} targets / masks; ~25% less HBM traffic).
    # TODO(synk): keep y/mask f32 if non-binary soft targets / weighted masks.
    f_p = pad2(f, B_pad, L_pad)
    y_p = pad2(y, B_pad, L_pad).astype(jnp.bfloat16)
    m_p = pad2(mask, B_pad, L_pad).astype(jnp.bfloat16)

    vmem_limit = int(max(vmem_budget, 32 << 20))

    kernel = functools.partial(_ploss_kernel,
                               num_ns_tiles=num_ns_tiles,
                               apply_bias=apply_bias)

    pmargin_p, loss_part = pl.pallas_call(
        kernel,
        grid=(num_b_tiles, num_ns_tiles),
        in_specs=[
            pl.BlockSpec((1, NS_TILE), lambda i, k: (0, k)),       # pad bias
            pl.BlockSpec((L_pad, NS_TILE), lambda i, k: (0, k)),   # S^T tile
            pl.BlockSpec((NS_TILE, L_pad), lambda i, k: (k, 0)),   # 1[S>0] tile
            pl.BlockSpec((TB, L_pad), lambda i, k: (i, 0)),        # f tile
            pl.BlockSpec((TB, L_pad), lambda i, k: (i, 0)),        # y tile
            pl.BlockSpec((TB, L_pad), lambda i, k: (i, 0)),        # mask tile
        ],
        out_specs=(
            pl.BlockSpec((TB, L_pad), lambda i, k: (i, 0)),        # pMargin tile
            pl.BlockSpec((1, 1, L_pad), lambda i, k: (i, 0, 0)),   # per-tile loss
        ),
        out_shape=(
            jax.ShapeDtypeStruct((B_pad, L_pad), jnp.float32),
            jax.ShapeDtypeStruct((num_b_tiles, 1, L_pad), jnp.float32),
        ),
        scratch_shapes=[
            pltpu.VMEM((TB, 1), jnp.float32),       # running max
            pltpu.VMEM((TB, 1), jnp.float32),       # running z
            pltpu.VMEM((TB, L_pad), jnp.float32),   # running numerator
        ],
        compiler_params=pltpu.CompilerParams(
            dimension_semantics=("parallel", "arbitrary"),
            vmem_limit_bytes=vmem_limit,
        ),
    )(bias, s_t, ind, f_p, y_p, m_p)

    loss = jnp.sum(loss_part) / jnp.float32(B)
    pmargin = pmargin_p[:B, :L]
    return loss, pmargin


def _ref_forward(f, S, y, mask):
    """Pure-JAX f32 reference of pLoss.forward (auto_mode=False)."""
    pot = f.astype(jnp.float32) @ S.astype(jnp.float32).T
    max_sf = jnp.max(pot, axis=1, keepdims=True)
    J = jnp.exp(pot - max_sf)
    z = jnp.sum(J, axis=1, keepdims=True)
    p = (J @ (S > 0).astype(jnp.float32)) / z
    log_p = jnp.maximum(jnp.log(p), -100.0)
    log_1mp = jnp.maximum(jnp.log(1.0 - p), -100.0)
    bce = -(y * log_p + (1.0 - y) * log_1mp)
    loss = jnp.sum(bce * mask) / f.shape[0]
    return loss, p


if __name__ == "__main__":
    key = jax.random.PRNGKey(0)
    k_f, k_s, k_y, k_m, k_s2 = jax.random.split(key, 5)

    # Case 1: small shapes -> single-NS-tile (resident S^T) path.
    B, L, NS = 8, 8, 16  # batch, num labels, num legal states
    S = (jax.random.uniform(k_s, (NS, L)) > 0.5).astype(jnp.float32)
    S = S.at[0, :].set(1.0)  # guarantee each label appears in a legal state
    f = jax.random.normal(k_f, (B, L), dtype=jnp.float32)
    y = (jax.random.uniform(k_y, (B, L)) > 0.5).astype(jnp.float32)
    mask = (jax.random.uniform(k_m, (B, L)) > 0.3).astype(jnp.float32)

    loss, pmargin = jax.jit(ploss_forward)(f, S, y, mask)
    jax.block_until_ready((loss, pmargin))
    assert pmargin.shape == (B, L)
    assert loss.shape == ()
    loss_ref, pmargin_ref = _ref_forward(f, S, y, mask)
    assert jnp.allclose(pmargin, pmargin_ref, rtol=5e-3, atol=1e-3), "pMargin mismatch (1)"
    assert jnp.allclose(loss, loss_ref, rtol=5e-3, atol=1e-2), "loss mismatch (1)"

    # Case 2: larger legal-state set forced through the NS-tiled
    # (flash-style online accumulation) path.
    NS2 = 300
    S2 = (jax.random.uniform(k_s2, (NS2, L)) > 0.5).astype(jnp.float32)
    S2 = S2.at[0, :].set(1.0)
    loss2, pmargin2 = jax.jit(
        functools.partial(ploss_forward, ns_tile=128))(f, S2, y, mask)
    jax.block_until_ready((loss2, pmargin2))
    loss2_ref, pmargin2_ref = _ref_forward(f, S2, y, mask)
    assert jnp.allclose(pmargin2, pmargin2_ref, rtol=5e-3, atol=1e-3), "pMargin mismatch (2)"
    assert jnp.allclose(loss2, loss2_ref, rtol=5e-3, atol=1e-2), "loss mismatch (2)"

    print("KERNEL_OK")
</pallas_src>

<mosaic_0001>
module attributes {stable_mosaic.version = 11 : i64} {
  func.func @_ploss_kernel(%arg0: i32, %arg1: i32, %arg2: memref<1x128xf32, #tpu.memory_space<vmem>>, %arg3: memref<128x128xf32, #tpu.memory_space<vmem>>, %arg4: memref<128x128xf32, #tpu.memory_space<vmem>>, %arg5: memref<32x128xf32, #tpu.memory_space<vmem>>, %arg6: memref<32x128xbf16, #tpu.memory_space<vmem>>, %arg7: memref<32x128xbf16, #tpu.memory_space<vmem>>, %arg8: memref<32x128xf32, #tpu.memory_space<vmem>>, %arg9: memref<1x1x128xf32, #tpu.memory_space<vmem>>, %arg10: memref<32x1xf32, #tpu.memory_space<vmem>>, %arg11: memref<32x1xf32, #tpu.memory_space<vmem>>, %arg12: memref<32x128xf32, #tpu.memory_space<vmem>>) attributes {dimension_semantics = [#tpu.dimension_semantics<parallel>, #tpu.dimension_semantics<arbitrary>], iteration_bounds = array<i64: 1, 1>, scalar_prefetch = 0 : i64, scratch_operands = 3 : i64, tpu.core_type = #tpu.core_type<tc>, window_params = [{transform_indices = @transform_0, window_bounds = array<i64: 1, 128>}, {transform_indices = @transform_1, window_bounds = array<i64: 128, 128>}, {transform_indices = @transform_2, window_bounds = array<i64: 128, 128>}, {transform_indices = @transform_3, window_bounds = array<i64: 32, 128>}, {transform_indices = @transform_4, window_bounds = array<i64: 32, 128>}, {transform_indices = @transform_5, window_bounds = array<i64: 32, 128>}, {transform_indices = @transform_6, window_bounds = array<i64: 32, 128>}, {transform_indices = @transform_7, window_bounds = array<i64: 1, 1, 128>}]} {
    %c0 = arith.constant 0 : index
    %c0_0 = arith.constant 0 : index
    %0 = vector.load %arg5[%c0, %c0_0] : memref<32x128xf32, #tpu.memory_space<vmem>>, vector<32x128xf32>
    %c0_1 = arith.constant 0 : index
    %c0_2 = arith.constant 0 : index
    %1 = vector.load %arg3[%c0_1, %c0_2] : memref<128x128xf32, #tpu.memory_space<vmem>>, vector<128x128xf32>
    %cst = arith.constant dense<0.000000e+00> : vector<32x128xf32>
    %2 = tpu.matmul %0, %1, %cst {dimension_numbers = #tpu.dot_dimension_numbers<[1], [0], [0], [1], [0, 0, 1, 1], [], []>} : vector<32x128xf32>, vector<128x128xf32>, vector<32x128xf32> -> vector<32x128xf32>
    %c0_3 = arith.constant 0 : index
    %c0_4 = arith.constant 0 : index
    %3 = vector.load %arg2[%c0_3, %c0_4] : memref<1x128xf32, #tpu.memory_space<vmem>>, vector<1x128xf32>
    %4 = vector.broadcast %3 : vector<1x128xf32> to vector<32x128xf32>
    %5 = arith.addf %2, %4 : vector<32x128xf32>
    %cst_5 = arith.constant dense<0xFF800000> : vector<32xf32>
    %6 = vector.multi_reduction <maximumf>, %5, %cst_5 [1] : vector<32x128xf32> to vector<32xf32>
    %7 = vector.shape_cast %6 : vector<32xf32> to vector<32x1xf32>
    %8 = vector.broadcast %7 : vector<32x1xf32> to vector<32x128xf32>
    %9 = arith.subf %5, %8 : vector<32x128xf32>
    %10 = math.exp %9 : vector<32x128xf32>
    %cst_6 = arith.constant dense<0.000000e+00> : vector<32xf32>
    %11 = vector.multi_reduction <add>, %10, %cst_6 [1] : vector<32x128xf32> to vector<32xf32>
    %12 = vector.shape_cast %11 : vector<32xf32> to vector<32x1xf32>
    %c0_7 = arith.constant 0 : index
    %c0_8 = arith.constant 0 : index
    %13 = vector.load %arg4[%c0_7, %c0_8] : memref<128x128xf32, #tpu.memory_space<vmem>>, vector<128x128xf32>
    %cst_9 = arith.constant dense<0.000000e+00> : vector<32x128xf32>
    %14 = tpu.matmul %10, %13, %cst_9 {dimension_numbers = #tpu.dot_dimension_numbers<[1], [0], [0], [1], [0, 0, 1, 1], [], []>} : vector<32x128xf32>, vector<128x128xf32>, vector<32x128xf32> -> vector<32x128xf32>
    %c0_10 = arith.constant 0 : index
    %c0_11 = arith.constant 0 : index
    %15 = vector.load %arg6[%c0_10, %c0_11] : memref<32x128xbf16, #tpu.memory_space<vmem>>, vector<32x128xbf16>
    %16 = arith.extf %15 : vector<32x128xbf16> to vector<32x128xf32>
    %c0_12 = arith.constant 0 : index
    %c0_13 = arith.constant 0 : index
    %17 = vector.load %arg7[%c0_12, %c0_13] : memref<32x128xbf16, #tpu.memory_space<vmem>>, vector<32x128xbf16>
    %18 = arith.extf %17 : vector<32x128xbf16> to vector<32x128xf32>
    %19 = tpu.reciprocal %12 {approx = true} : vector<32x1xf32> -> vector<32x1xf32>
    %20 = arith.mulf %12, %19 : vector<32x1xf32>
    %cst_14 = arith.constant 2.000000e+00 : f32
    %21 = vector.broadcast %cst_14 : f32 to vector<32x1xf32>
    %22 = arith.subf %21, %20 : vector<32x1xf32>
    %23 = arith.mulf %19, %22 : vector<32x1xf32>
    %24 = vector.broadcast %23 : vector<32x1xf32> to vector<32x128xf32>
    %25 = arith.mulf %14, %24 : vector<32x128xf32>
    %cst_15 = arith.constant 0.000000e+00 : f32
    %cst_16 = arith.constant 1.000000e+00 : f32
    %26 = vector.broadcast %cst_15 : f32 to vector<32x128xf32>
    %27 = arith.maximumf %26, %25 : vector<32x128xf32>
    %28 = vector.broadcast %cst_16 : f32 to vector<32x128xf32>
    %29 = arith.minimumf %28, %27 : vector<32x128xf32>
    %c0_17 = arith.constant 0 : index
    %c0_18 = arith.constant 0 : index
    %30 = vector.load %arg8[%c0_17, %c0_18] : memref<32x128xf32, #tpu.memory_space<vmem>>, vector<32x128xf32>
    tpu.vector_store %arg8[%c0_17, %c0_18], %29 {strides = array<i32>} : memref<32x128xf32, #tpu.memory_space<vmem>>, vector<32x128xf32>,
    %31 = math.log %12 : vector<32x1xf32>
    %32 = math.log %14 : vector<32x128xf32>
    %33 = vector.broadcast %31 : vector<32x1xf32> to vector<32x128xf32>
    %34 = arith.subf %32, %33 : vector<32x128xf32>
    %cst_19 = arith.constant -1.000000e+02 : f32
    %35 = vector.broadcast %cst_19 : f32 to vector<32x128xf32>
    %36 = arith.maximumf %34, %35 : vector<32x128xf32>
    %37 = vector.broadcast %12 : vector<32x1xf32> to vector<32x128xf32>
    %38 = arith.subf %37, %14 : vector<32x128xf32>
    %cst_20 = arith.constant 0.000000e+00 : f32
    %39 = vector.broadcast %cst_20 : f32 to vector<32x128xf32>
    %40 = arith.maximumf %38, %39 : vector<32x128xf32>
    %41 = math.log %40 : vector<32x128xf32>
    %42 = vector.broadcast %31 : vector<32x1xf32> to vector<32x128xf32>
    %43 = arith.subf %41, %42 : vector<32x128xf32>
    %cst_21 = arith.constant -1.000000e+02 : f32
    %44 = vector.broadcast %cst_21 : f32 to vector<32x128xf32>
    %45 = arith.maximumf %43, %44 : vector<32x128xf32>
    %46 = arith.mulf %16, %36 : vector<32x128xf32>
    %cst_22 = arith.constant 1.000000e+00 : f32
    %47 = vector.broadcast %cst_22 : f32 to vector<32x128xf32>
    %48 = arith.subf %47, %16 : vector<32x128xf32>
    %49 = arith.mulf %48, %45 : vector<32x128xf32>
    %50 = arith.addf %46, %49 : vector<32x128xf32>
    %cst_23 = arith.constant 0.000000e+00 : f32
    %51 = vector.broadcast %cst_23 : f32 to vector<32x128xf32>
    %52 = arith.subf %51, %50 : vector<32x128xf32>
    %53 = arith.mulf %52, %18 : vector<32x128xf32>
    %cst_24 = arith.constant dense<0.000000e+00> : vector<128xf32>
    %54 = vector.multi_reduction <add>, %53, %cst_24 [0] : vector<32x128xf32> to vector<128xf32>
    %55 = vector.shape_cast %54 : vector<128xf32> to vector<1x128xf32>
    %56 = vector.shape_cast %55 : vector<1x128xf32> to vector<1x1x128xf32>
    %c0_25 = arith.constant 0 : index
    %c0_26 = arith.constant 0 : index
    %c0_27 = arith.constant 0 : index
    %57 = vector.load %arg9[%c0_25, %c0_26, %c0_27] : memref<1x1x128xf32, #tpu.memory_space<vmem>>, vector<1x1x128xf32>
    tpu.vector_store %arg9[%c0_25, %c0_26, %c0_27], %56 {strides = array<i32>} : memref<1x1x128xf32, #tpu.memory_space<vmem>>, vector<1x1x128xf32>,
    return
  }
  func.func @transform_0(%arg0: i32, %arg1: i32) -> (i32, i32) {
    %c0_i32 = arith.constant 0 : i32
    %c0_i32_0 = arith.constant 0 : i32
    return %c0_i32, %arg1 : i32, i32
  }
  func.func @transform_1(%arg0: i32, %arg1: i32) -> (i32, i32) {
    %c0_i32 = arith.constant 0 : i32
    %c0_i32_0 = arith.constant 0 : i32
    return %c0_i32, %arg1 : i32, i32
  }
  func.func @transform_2(%arg0: i32, %arg1: i32) -> (i32, i32) {
    %c0_i32 = arith.constant 0 : i32
    %c0_i32_0 = arith.constant 0 : i32
    return %arg1, %c0_i32 : i32, i32
  }
  func.func @transform_3(%arg0: i32, %arg1: i32) -> (i32, i32) {
    %c0_i32 = arith.constant 0 : i32
    %c0_i32_0 = arith.constant 0 : i32
    return %arg0, %c0_i32 : i32, i32
  }
  func.func @transform_4(%arg0: i32, %arg1: i32) -> (i32, i32) {
    %c0_i32 = arith.constant 0 : i32
    %c0_i32_0 = arith.constant 0 : i32
    return %arg0, %c0_i32 : i32, i32
  }
  func.func @transform_5(%arg0: i32, %arg1: i32) -> (i32, i32) {
    %c0_i32 = arith.constant 0 : i32
    %c0_i32_0 = arith.constant 0 : i32
    return %arg0, %c0_i32 : i32, i32
  }
  func.func @transform_6(%arg0: i32, %arg1: i32) -> (i32, i32) {
    %c0_i32 = arith.constant 0 : i32
    %c0_i32_0 = arith.constant 0 : i32
    return %arg0, %c0_i32 : i32, i32
  }
  func.func @transform_7(%arg0: i32, %arg1: i32) -> (i32, i32, i32) {
    %c0_i32 = arith.constant 0 : i32
    %c0_i32_0 = arith.constant 0 : i32
    %c0_i32_1 = arith.constant 0 : i32
    return %arg0, %c0_i32, %c0_i32_0 : i32, i32, i32
  }
}

</mosaic_0001>

<bundles_post_ra>
// kernel: ploss_forward.1
= control target key start
LH: loop header
LB: loop body
LE: loop exit
PB: predicated region body
PF: predicated region fallthrough
CT: control target
= control target key end

     0   :  { %s558_s1 = inlined_call_operand.vmem [shape: f32[128,128], index: 1, kind: input, shape index: {}]   ;;  %s559_s0 = inlined_call_operand.vmem [shape: f32[1,128], index: 0, kind: input, shape index: {}]   ;;  %s560_s3 = inlined_call_operand.vmem [shape: f32[32,128], index: 3, kind: input, shape index: {}]   ;;  %s561_s2 = inlined_call_operand.vmem [shape: f32[128,128], index: 2, kind: input, shape index: {}]   ;;  %s562_s6 = inlined_call_operand.vmem [shape: f32[32,128], index: 6, kind: output, shape index: {0}]   ;;  %s563_s4 = inlined_call_operand.vmem [shape: bf16[32,128], index: 4, kind: input, shape index: {}]   ;;  %s564_s5 = inlined_call_operand.vmem [shape: bf16[32,128], index: 5, kind: input, shape index: {}]   ;;  %s565_s7 = inlined_call_operand.vmem [shape: f32[1,1,128], index: 7, kind: output, shape index: {1}]  }
   0x1   :  { %v44_v0 = vld [vmem:[%s558_s1 + $0x78] sm:$0xff]  ;;  %v43_v1 = vld [vmem:[%s558_s1 + $0x70] sm:$0xff]  ;;  %v42_v2 = vld [vmem:[%s558_s1 + $0x68] sm:$0xff] }
   0x2   :  { %307 = vmatpush.msra.mxu2 %v44_v0  ;;  %49 = vmatpush.msra.mxu0 %v44_v0  ;;  %v41_v3 = vld [vmem:[%s558_s1 + $0x60] sm:$0xff]  ;;  %v40_v4 = vld [vmem:[%s558_s1 + $0x58] sm:$0xff]  ;;  %v39_v5 = vld [vmem:[%s558_s1 + $0x50] sm:$0xff] }
   0x3   :  { %v38_v6 = vld [vmem:[%s558_s1 + $0x48] sm:$0xff]  ;;  %v37_v7 = vld [vmem:[%s558_s1 + $0x40] sm:$0xff]  ;;  %v36_v8 = vld [vmem:[%s558_s1 + $0x38] sm:$0xff] }
   0x4   :  { %308 = vmatpush.msra.mxu2 %v43_v1  ;;  %50 = vmatpush.msra.mxu0 %v43_v1  ;;  %v35_v9 = vld [vmem:[%s558_s1 + $0x30] sm:$0xff]  ;;  %v34_v10 = vld [vmem:[%s558_s1 + $0x28] sm:$0xff]  ;;  %v33_v11 = vld [vmem:[%s558_s1 + $0x20] sm:$0xff] }
   0x5   :  { %v32_v12 = vld [vmem:[%s558_s1 + $0x18] sm:$0xff]  ;;  %v31_v13 = vld [vmem:[%s558_s1 + $0x10] sm:$0xff]  ;;  %v30_v14 = vld [vmem:[%s558_s1 + $0x8] sm:$0xff] }
   0x6   :  { %309 = vmatpush.msra.mxu2 %v42_v2  ;;  %51 = vmatpush.msra.mxu0 %v42_v2  ;;  %v29_v15 = vld [vmem:[%s558_s1] sm:$0xff]  ;;  %v27_v16 = vld [vmem:[%s560_s3 + $0x10] sm:$0xff]  ;;  %v28_v18 = vld [vmem:[%s560_s3 + $0x18] sm:$0xff] }
   0x7   :  { %v25_v17 = vld [vmem:[%s560_s3] sm:$0xff]  ;;  %v26_v19 = vld [vmem:[%s560_s3 + $0x8] sm:$0xff]  ;;  %v121_v20 = vld [vmem:[%s561_s2 + $0x78] sm:$0xff] }
   0x8   :  { %310 = vmatpush.msra.mxu2 %v41_v3  ;;  %52 = vmatpush.msra.mxu0 %v41_v3  ;;  %v120_v21 = vld [vmem:[%s561_s2 + $0x70] sm:$0xff]  ;;  %v119_v22 = vld [vmem:[%s561_s2 + $0x68] sm:$0xff]  ;;  %v118_v23 = vld [vmem:[%s561_s2 + $0x60] sm:$0xff] }
   0x9   :  { %323 = vmatpush.msra.mxu3 %v121_v20  ;;  %122 = vmatpush.msra.mxu1 %v121_v20  ;;  %v117_v24 = vld [vmem:[%s561_s2 + $0x58] sm:$0xff]  ;;  %v116_v25 = vld [vmem:[%s561_s2 + $0x50] sm:$0xff]  ;;  %v339_v26 = vld [vmem:[%s559_s0] ss:$0 sm:$0xff] }
   0xa   :  { %311 = vmatpush.msra.mxu2 %v40_v4  ;;  %53 = vmatpush.msra.mxu0 %v40_v4  ;;  %v115_v27 = vld [vmem:[%s561_s2 + $0x48] sm:$0xff]  ;;  %v114_v28 = vld [vmem:[%s561_s2 + $0x40] sm:$0xff]  ;;  %v113_v31 = vld [vmem:[%s561_s2 + $0x38] sm:$0xff] }
   0xb   :  { %324 = vmatpush.msra.mxu3 %v120_v21  ;;  %123 = vmatpush.msra.mxu1 %v120_v21  ;;  %v112_v33 = vld [vmem:[%s561_s2 + $0x30] sm:$0xff]  ;;  %v111_v39 = vld [vmem:[%s561_s2 + $0x28] sm:$0xff]  ;;  %v110_v40 = vld [vmem:[%s561_s2 + $0x20] sm:$0xff] }
   0xc   :  { %312 = vmatpush.msra.mxu2 %v39_v5  ;;  %54 = vmatpush.msra.mxu0 %v39_v5  ;;  %v109_v41 = vld [vmem:[%s561_s2 + $0x18] sm:$0xff]  ;;  %v108_v42 = vld [vmem:[%s561_s2 + $0x10] sm:$0xff]  ;;  %v107_v43 = vld [vmem:[%s561_s2 + $0x8] sm:$0xff] }
   0xd   :  { %325 = vmatpush.msra.mxu3 %v119_v22  ;;  %124 = vmatpush.msra.mxu1 %v119_v22  ;;  %v106_v44 = vld [vmem:[%s561_s2] sm:$0xff] }
   0xe   :  { %313 = vmatpush.msra.mxu2 %v38_v6  ;;  %55 = vmatpush.msra.mxu0 %v38_v6 }
   0xf   :  { %326 = vmatpush.msra.mxu3 %v118_v23  ;;  %125 = vmatpush.msra.mxu1 %v118_v23 }
  0x10   :  { %314 = vmatpush.msra.mxu2 %v37_v7  ;;  %56 = vmatpush.msra.mxu0 %v37_v7 }
  0x11   :  { %327 = vmatpush.msra.mxu3 %v117_v24  ;;  %126 = vmatpush.msra.mxu1 %v117_v24 }
  0x12   :  { %315 = vmatpush.msra.mxu2 %v36_v8  ;;  %57 = vmatpush.msra.mxu0 %v36_v8 }
  0x13   :  { %328 = vmatpush.msra.mxu3 %v116_v25  ;;  %127 = vmatpush.msra.mxu1 %v116_v25 }
  0x14   :  { %316 = vmatpush.msra.mxu2 %v35_v9  ;;  %58 = vmatpush.msra.mxu0 %v35_v9 }
  0x15   :  { %329 = vmatpush.msra.mxu3 %v115_v27  ;;  %128 = vmatpush.msra.mxu1 %v115_v27 }
  0x16   :  { %317 = vmatpush.msra.mxu2 %v34_v10  ;;  %59 = vmatpush.msra.mxu0 %v34_v10 }
  0x17   :  { %330 = vmatpush.msra.mxu3 %v114_v28  ;;  %129 = vmatpush.msra.mxu1 %v114_v28 }
  0x18   :  { %318 = vmatpush.msra.mxu2 %v33_v11  ;;  %60 = vmatpush.msra.mxu0 %v33_v11 }
  0x19   :  { %331 = vmatpush.msra.mxu3 %v113_v31  ;;  %130 = vmatpush.msra.mxu1 %v113_v31 }
  0x1a   :  { %319 = vmatpush.msra.mxu2 %v32_v12  ;;  %61 = vmatpush.msra.mxu0 %v32_v12 }
  0x1b   :  { %332 = vmatpush.msra.mxu3 %v112_v33  ;;  %131 = vmatpush.msra.mxu1 %v112_v33 }
  0x1c   :  { %320 = vmatpush.msra.mxu2 %v31_v13  ;;  %62 = vmatpush.msra.mxu0 %v31_v13 }
  0x1d   :  { %333 = vmatpush.msra.mxu3 %v111_v39  ;;  %132 = vmatpush.msra.mxu1 %v111_v39 }
  0x1e   :  { %321 = vmatpush.msra.mxu2 %v30_v14  ;;  %63 = vmatpush.msra.mxu0 %v30_v14 }
  0x1f   :  { %334 = vmatpush.msra.mxu3 %v110_v40  ;;  %133 = vmatpush.msra.mxu1 %v110_v40 }
  0x20   :  { %322 = vmatpush.msra.mxu2 %v29_v15  ;;  %64 = vmatpush.msra.mxu0 %v29_v15 }
  0x21   :  { %71 = vmatmul.f32.vlgmr.msra.gmra.mxu2 %v27_v16  ;;  %65 = vmatmul.f32.vlgmr.msra.gmra.mxu0 %v25_v17 }
  0x22   :  { %335 = vmatpush.msra.mxu3 %v109_v41  ;;  %134 = vmatpush.msra.mxu1 %v109_v41 }
  0x24   :  { %336 = vmatpush.msra.mxu3 %v108_v42  ;;  %135 = vmatpush.msra.mxu1 %v108_v42 }
  0x26   :  { %337 = vmatpush.msra.mxu3 %v107_v43  ;;  %136 = vmatpush.msra.mxu1 %v107_v43 }
  0x28   :  { %338 = vmatpush.msra.mxu3 %v106_v44  ;;  %137 = vmatpush.msra.mxu1 %v106_v44 }
  0x29   :  { %74 = vmatmul.f32.gmra.mxu2 %v28_v18  ;;  %68 = vmatmul.f32.gmra.mxu0 %v26_v19 }
  0x9e   :  { %v66_v32 = vpop.f32.mrf.mxu0 }
  0x9f   :  { %v67_v34 = vadd.f32 %v339_v26, %v66_v32 }
  0xa4   :  { %v72_v29 = vpop.f32.mrf.mxu2 }
  0xa5   :  { %v73_v30 = vadd.f32 %v339_v26, %v72_v29 }
  0xa6   :  { %v69_v37 = vpop.f32.mrf.mxu0 }
  0xa7   :  { %82 = vmax.xlane.f32.xlu0 %v73_v30  ;;  %v70_v38 = vadd.f32 %v339_v26, %v69_v37 }
  0xac   :  { %v75_v35 = vpop.f32.mrf.mxu2 }
  0xad   :  { %v76_v36 = vadd.f32 %v339_v26, %v75_v35 }
  0xaf   :  { %84 = vmax.xlane.f32.xlu1 %v76_v36  ;;  %78 = vmax.xlane.f32.xlu0 %v67_v34 }
  0xb7   :  { %80 = vmax.xlane.f32.xlu1 %v70_v38 }
 0x11a   :  { %v83_v45 = vpop.xlane.xlu0 %82 }
 0x11b   :  { %v88_v46 = vsub.f32 %v73_v30, %v83_v45 }
 0x11d   :  { %v94_v47 = vmul.f32 1.442695, %v88_v46 }
 0x11f   :  { %340 = vpow2.f32 %v94_v47  ;;  %v290_v47 = vld [vmem:[%s563_s4] sm:$0xff]  }
 0x122   :  { %v85_v48 = vpop.xlane.xlu1 %84  ;;  %v79_v49 = vpop.xlane.xlu0 %78 }
 0x123   :  { %v89_v50 = vsub.f32 %v76_v36, %v85_v48  ;;  %v86_v51 = vsub.f32 %v67_v34, %v79_v49 }
 0x125   :  { %v341_v52 = vpop.eup %340  ;;  %v96_v53 = vmul.f32 1.442695, %v89_v50  ;;  %v90_v54 = vmul.f32 1.442695, %v86_v51 }
 0x126   :  { %144 = vmatmul.f32.vlgmr.msra.gmra.mxu3 %v341_v52  ;;  %102 = vadd.xlane.f32.xlu0 %v341_v52 }
 0x127   :  { %342 = vpow2.f32 %v96_v53 }
 0x128   :  { %344 = vpow2.f32 %v90_v54  ;;  %v305_v54 = vld [vmem:[%s563_s4 + $0x8] sm:$0xff]  }
 0x12a   :  { %v81_v55 = vpop.xlane.xlu1 %80 }
 0x12b   :  { %v87_v56 = vsub.f32 %v70_v38, %v81_v55 }
 0x12d   :  { %v343_v57 = vpop.eup %342  ;;  %v92_v58 = vmul.f32 1.442695, %v87_v56 }
 0x12e   :  { %v345_v59 = vpop.eup %344  ;;  %147 = vmatmul.f32.gmra.mxu3 %v343_v57  ;;  %104 = vadd.xlane.f32.xlu1 %v343_v57 }
 0x12f   :  { %346 = vpow2.f32 %v92_v58  ;;  %98 = vadd.xlane.f32.xlu2 %v345_v59  ;;  %138 = vmatmul.f32.vlgmr.msra.gmra.mxu1 %v345_v59  ;;  %v291_v59 = vunpack.c.l.bf16 %v290_v47 }
 0x135   :  { %v347_v60 = vpop.eup %346 }
 0x137   :  { %100 = vadd.xlane.f32.xlu2 %v347_v60  ;;  %141 = vmatmul.f32.gmra.mxu1 %v347_v60 }
 0x199   :  { %v103_v61 = vpop.xlane.xlu0 %102 }
 0x19a   :  { %348 = vrcp.f32 %v103_v61 }
 0x1a0   :  { %v349_v62 = vpop.eup %348 }
 0x1a1   :  { %v173_v63 = vmul.f32 %v349_v62, %v103_v61  ;;  %v105_v0 = vpop.xlane.xlu1 %104 }
 0x1a2   :  { %350 = vrcp.f32 %v105_v0  ;;  %v99_v1 = vpop.xlane.xlu2 %98 }
 0x1a3   :  { %v177_v2 = vsub.f32 2.0, %v173_v63  ;;  %352 = vrcp.f32 %v99_v1 }
 0x1a5   :  { %v181_v4 = vmul.f32 %v349_v62, %v177_v2 }
 0x1a8   :  { %v351_v3 = vpop.eup %350 }
 0x1a9   :  { %v174_v5 = vmul.f32 %v351_v3, %v105_v0  ;;  %v145_v6 = vpop.f32.mrf.mxu3  ;;  %v353_v7 = vpop.eup %352 }
 0x1aa   :  { %v185_v8 = vmul.f32 %v181_v4, %v145_v6  ;;  %v225_v9 = vsub.f32 %v103_v61, %v145_v6  ;;  %v101_v10 = vpop.xlane.xlu2 %100  ;;  %v171_v11 = vmul.f32 %v353_v7, %v99_v1 }
 0x1ab   :  { %354 = vrcp.f32 %v101_v10  ;;  %v178_v12 = vsub.f32 2.0, %v174_v5 }
 0x1ac   :  { %356 = vlog2.f32 %v103_v61  ;;  %v189_v13 = vmax.f32 %v185_v8, 0.0  ;;  %v229_v14 = vmax.f32 %v225_v9, 0.0  ;;  %v139_v15 = vpop.f32.mrf.mxu1  ;;  %v175_v16 = vsub.f32 2.0, %v171_v11 }
 0x1ad   :  { %358 = vlog2.f32 %v99_v1  ;;  %v223_v17 = vsub.f32 %v99_v1, %v139_v15  ;;  %v182_v21 = vmul.f32 %v351_v3, %v178_v12  ;;  %v295_v3 = vunpack.c.l.bf16 %v305_v54 }
 0x1ae   :  { %v193_v18 = vmin.f32 %v189_v13, 1.0  ;;  %360 = vlog2.f32 %v139_v15  ;;  %v179_v19 = vmul.f32 %v353_v7, %v175_v16  ;;  %v251_v8 = vsub.f32 1.0, %v291_v59 }
 0x1af   :  { %362 = vlog2.f32 %v229_v14  ;;  %v227_v20 = vmax.f32 %v223_v17, 0.0  ;;  %v253_v13 = vsub.f32 1.0, %v295_v3 }
 0x1b0   :  { %197 = vst [vmem:[%s562_s6 + $0x10] sm:$0xff] %v193_v18  ;;  %364 = vlog2.f32 %v145_v6  ;;  %v183_v23 = vmul.f32 %v179_v19, %v139_v15  ;;  %v292_v18 = vunpack.c.h.bf16 %v290_v47 }
 0x1b1   :  { %v355_v22 = vpop.eup %354  ;;  %366 = vlog2.f32 %v227_v20  ;;  %v148_v24 = vpop.f32.mrf.mxu3 }
 0x1b2   :  { %v357_v25 = vpop.eup %356  ;;  %368 = vlog2.f32 %v105_v0  ;;  %v172_v26 = vmul.f32 %v355_v22, %v101_v10  ;;  %v186_v27 = vmul.f32 %v182_v21, %v148_v24  ;;  %v226_v28 = vsub.f32 %v105_v0, %v148_v24 }
 0x1b3   :  { %v359_v29 = vpop.eup %358  ;;  %v187_v30 = vmax.f32 %v183_v23, 0.0  ;;  %370 = vlog2.f32 %v148_v24  ;;  %v204_v53 = vmul.f32 0.6931472, %v357_v25  ;;  %v252_v24 = vsub.f32 1.0, %v292_v18 }
 0x1b4   :  { %v361_v31 = vpop.eup %360  ;;  %v176_v32 = vsub.f32 2.0, %v172_v26  ;;  %372 = vlog2.f32 %v101_v10  ;;  %v190_v33 = vmax.f32 %v186_v27, 0.0  ;;  %v230_v34 = vmax.f32 %v226_v28, 0.0  ;;  %v142_v35 = vpop.f32.mrf.mxu1 }
 0x1b5   :  { %v363_v36 = vpop.eup %362  ;;  %v191_v37 = vmin.f32 %v187_v30, 1.0  ;;  %374 = vlog2.f32 %v142_v35  ;;  %v200_v42 = vmul.f32 0.6931472, %v359_v29  ;;  %v208_v43 = vmul.f32 0.6931472, %v361_v31  ;;  %v298_v30 = vld [vmem:[%s564_s5] sm:$0xff]  }
 0x1b6   :  { %v365_v38 = vpop.eup %364  ;;  %v194_v39 = vmin.f32 %v190_v33, 1.0  ;;  %376 = vlog2.f32 %v230_v34  ;;  %v180_v40 = vmul.f32 %v355_v22, %v176_v32  ;;  %v224_v44 = vsub.f32 %v101_v10, %v142_v35 }
 0x1b7   :  { %v367_v41 = vpop.eup %366  ;;  %195 = vst [vmem:[%s562_s6] sm:$0xff] %v191_v37  ;;  %v236_v46 = vmul.f32 0.6931472, %v363_v36  ;;  %v212_v55 = vmul.f32 0.6931472, %v365_v38  ;;  %v215_v60 = vsub.f32 %v208_v43, %v200_v42  ;;  %v296_v10 = vunpack.c.h.bf16 %v305_v54  ;;  %v306_v38 = vld [vmem:[%s564_s5 + $0x8] sm:$0xff]  }
 0x1b8   :  { %v369_v45 = vpop.eup %368  ;;  %v232_v48 = vmul.f32 0.6931472, %v367_v41  ;;  %198 = vst [vmem:[%s562_s6 + $0x18] sm:$0xff] %v194_v39  ;;  %v184_v49 = vmul.f32 %v180_v40, %v142_v35  ;;  %v228_v51 = vmax.f32 %v224_v44, 0.0  ;;  %v299_v39 = vunpack.c.l.bf16 %v298_v30 }
 0x1b9   :  { %v371_v50 = vpop.eup %370  ;;  %v241_v62 = vsub.f32 %v236_v46, %v204_v53  ;;  %v206_v2 = vmul.f32 0.6931472, %v369_v45  ;;  %v217_v5 = vsub.f32 %v212_v55, %v204_v53  ;;  %v219_v9 = vmax.f32 %v215_v60, -100.0 }
 0x1ba   :  { %v373_v52 = vpop.eup %372  ;;  %v239_v56 = vsub.f32 %v232_v48, %v200_v42  ;;  %v188_v57 = vmax.f32 %v184_v49, 0.0  ;;  %378 = vlog2.f32 %v228_v51  ;;  %v214_v63 = vmul.f32 0.6931472, %v371_v50 }
 0x1bb   :  { %v375_v58 = vpop.eup %374  ;;  %v202_v6 = vmul.f32 0.6931472, %v373_v52  ;;  %v245_v12 = vmax.f32 %v241_v62, -100.0  ;;  %v254_v17 = vsub.f32 1.0, %v296_v10  ;;  %v221_v19 = vmax.f32 %v217_v5, -100.0 }
 0x1bc   :  { %v377_v61 = vpop.eup %376  ;;  %v192_v0 = vmin.f32 %v188_v57, 1.0  ;;  %v210_v1 = vmul.f32 0.6931472, %v375_v58  ;;  %v243_v7 = vmax.f32 %v239_v56, -100.0  ;;  %v218_v14 = vsub.f32 %v214_v63, %v206_v2 }
 0x1bd   :  { %v238_v4 = vmul.f32 0.6931472, %v377_v61  ;;  %v247_v23 = vmul.f32 %v291_v59, %v219_v9  ;;  %v257_v25 = vmul.f32 %v253_v13, %v245_v12  ;;  %v249_v29 = vmul.f32 %v295_v3, %v221_v19 }
 0x1be   :  { %196 = vst [vmem:[%s562_s6 + $0x8] sm:$0xff] %v192_v0  ;;  %v216_v15 = vsub.f32 %v210_v1, %v202_v6  ;;  %v255_v20 = vmul.f32 %v251_v8, %v243_v7  ;;  %v222_v26 = vmax.f32 %v218_v14, -100.0  ;;  %v300_v42 = vunpack.c.h.bf16 %v298_v30 }
 0x1bf   :  { %v242_v11 = vsub.f32 %v238_v4, %v206_v2  ;;  %v261_v34 = vadd.f32 %v257_v25, %v249_v29  ;;  %v303_v44 = vunpack.c.l.bf16 %v306_v38  ;;  %v304_v48 = vunpack.c.h.bf16 %v306_v38 }
 0x1c0   :  { %v379_v16 = vpop.eup %378  ;;  %v220_v27 = vmax.f32 %v216_v15, -100.0  ;;  %v259_v31 = vadd.f32 %v255_v20, %v247_v23  ;;  %v250_v35 = vmul.f32 %v296_v10, %v222_v26 }
 0x1c1   :  { %v246_v21 = vmax.f32 %v242_v11, -100.0  ;;  %v234_v22 = vmul.f32 0.6931472, %v379_v16  ;;  %v265_v45 = vsub.f32 0.0, %v261_v34 }
 0x1c2   :  { %v248_v36 = vmul.f32 %v292_v18, %v220_v27  ;;  %v263_v40 = vsub.f32 0.0, %v259_v31 }
 0x1c3   :  { %v240_v28 = vsub.f32 %v234_v22, %v202_v6  ;;  %v258_v32 = vmul.f32 %v254_v17, %v246_v21  ;;  %v269_v51 = vmul.f32 %v303_v44, %v265_v45 }
 0x1c4   :  { %v267_v47 = vmul.f32 %v299_v39, %v263_v40 }
 0x1c5   :  { %v244_v33 = vmax.f32 %v240_v28, -100.0  ;;  %v262_v41 = vadd.f32 %v258_v32, %v250_v35 }
 0x1c7   :  { %v256_v37 = vmul.f32 %v252_v24, %v244_v33  ;;  %v266_v49 = vsub.f32 0.0, %v262_v41 }
 0x1c9   :  { %v260_v43 = vadd.f32 %v256_v37, %v248_v36  ;;  %v270_v53 = vmul.f32 %v304_v48, %v266_v49 }
 0x1cb   :  { %v264_v46 = vsub.f32 0.0, %v260_v43 }
 0x1cd   :  { %v268_v50 = vmul.f32 %v300_v42, %v264_v46 }
 0x1cf   :  { %v271_v52 = vadd.f32 %v268_v50, %v267_v47 }
 0x1d1   :  { %v272_v54 = vadd.f32 %v271_v52, %v269_v51 }
 0x1d3   :  { %v273_v55 = vadd.f32 %v272_v54, %v270_v53 }
 0x1d5   :  { %v274_v56 = vrot.slane %v273_v55, 4 }
 0x1d7   :  { %v275_v57 = vadd.f32 %v274_v56, %v273_v55 }
 0x1d9   :  { %v276_v58 = vrot.slane %v275_v57, 2 }
 0x1db   :  { %v277_v59 = vadd.f32 %v276_v58, %v275_v57 }
 0x1dd   :  { %v278_v60 = vrot.slane %v277_v59, 1 }
 0x1df   :  { %v279_v61 = vadd.f32 %v278_v60, %v277_v59 }
 0x1e1   :  { %280 = vst [vmem:[%s565_s7] sm:$0x1] %v279_v61 }

</bundles_post_ra>
